<compile_context>
chip_gen: v5e
topology: v5e:2x2
jax: 0.10.0
libtpu: 0.0.40
codegen_flags: <defaults>
</compile_context>

<pallas_src>
import functools

import jax
import jax.numpy as jnp
from jax.experimental import pallas as pl
from jax.experimental.pallas import tpu as pltpu

_LANES = 128
_ACC_R = 8            # sublane rows of the resident accumulator
_MAX_TILE_R = 4096    # rows per grid step (2 MiB f32 block) -> amortizes step overhead
_ROW_ALIGN = 32       # covers f32/bf16 logits and int8/int32 labels sublane tiles

_ARBITRARY = getattr(pltpu, "ARBITRARY", "arbitrary")
_CORE_PARALLEL = getattr(pltpu, "CORE_PARALLEL", "parallel")


def _round_up(x, m):
    return ((x + m - 1) // m) * m


def _num_tensorcores():
    """2 on dual-TensorCore chips (v7x); 1 on v5e/v6e/unknown."""
    try:
        kind = jax.devices()[0].device_kind.lower()
    except Exception:
        return 1
    return 2 if "v7" in kind else 1


def _pu_kernel(y_ref, lab_ref, part_ref, *, tile_r, rows, steps_per_core):
    """Accumulate masked partial sums into this core's resident (5, 8, 128) block.

    part_ref rows:
      [0] sum_{pos} softplus(-y)   [1] sum_{pos} softplus(y)
      [2] sum_{unl} softplus(y)    [3] n_pos     [4] n_unl
    """
    c = pl.program_id(0)
    i = pl.program_id(1)

    # Zero this core's accumulator block on its first inner step.
    @pl.when(i == 0)
    def _():
        part_ref[...] = jnp.zeros_like(part_ref)

    # Row-validity mask: handles the partial last block (undefined tail rows)
    # and fully out-of-range blocks on the second core.
    blk = c * steps_per_core + i                      # logical (unclamped) block id
    row0 = blk * tile_r
    row_ids = row0 + jax.lax.broadcasted_iota(jnp.int32, (tile_r, _LANES), 0)
    valid = row_ids < rows

    y = y_ref[...].astype(jnp.float32)                # bf16 inputs upcast in-kernel
    y = jnp.where(valid, y, 0.0)                      # sanitize undefined tail rows
    lab = lab_ref[...]

    posf = (valid & (lab == 1)).astype(jnp.float32)
    unlf = (valid & (lab == 0)).astype(jnp.float32)

    # Numerically-stable softplus, same formulation as torch's BCEWithLogits.
    sp_pos = jnp.maximum(y, 0.0) + jnp.log1p(jnp.exp(-jnp.abs(y)))   # softplus(y)  == BCE(y, 0)
    sp_neg = sp_pos - y                                              # softplus(-y) == BCE(y, 1)

    def part(x):
        # (tile_r, 128) -> (8, 128): sublane-tile adds only; keeps the resident
        # accumulator at 5*8*128 f32 (20 KiB) regardless of tile size.
        return x.reshape(tile_r // _ACC_R, _ACC_R, _LANES).sum(axis=0)

    part_ref[0] += part(sp_neg * posf)
    part_ref[1] += part(sp_pos * posf)
    part_ref[2] += part(sp_pos * unlf)
    part_ref[3] += part(posf)
    part_ref[4] += part(unlf)


def _masked_sums_jax(y, lab):
    """Pure-JAX path for tiny inputs / the <128-element tail."""
    y = y.astype(jnp.float32)
    pos = lab == 1
    unl = lab == 0
    sp_pos = jax.nn.softplus(y)
    sp_neg = jax.nn.softplus(-y)
    zero = jnp.zeros_like(y)
    return jnp.stack([
        jnp.sum(jnp.where(pos, sp_neg, zero)),
        jnp.sum(jnp.where(pos, sp_pos, zero)),
        jnp.sum(jnp.where(unl, sp_pos, zero)),
        jnp.sum(pos.astype(jnp.float32)),
        jnp.sum(unl.astype(jnp.float32)),
    ])


def nnpu_loss(outputs, labels, prior, beta=0.0, gamma=1.0, nnPU=True):
    """Pallas TPU implementation of nnPULoss.forward."""
    y = outputs.reshape(-1)
    if y.dtype != jnp.float32 and y.dtype != jnp.bfloat16:
        y = y.astype(jnp.float32)
    lab = labels.reshape(-1)
    if lab.dtype != jnp.int32 and lab.dtype != jnp.int8:
        lab = lab.astype(jnp.int32)

    n = y.shape[0]
    rows = n // _LANES            # number of full 128-lane rows
    n_main = rows * _LANES
    rem = n - n_main

    if rows < _ROW_ALIGN:
        # Tiny input: not worth a kernel launch.
        sums = _masked_sums_jax(y, lab)
    else:
        # Zero-copy reshape when n is 128-aligned; otherwise only the sub-row
        # tail (<128 elements) is handled in plain JAX.  No full-array pad.
        y_main = (y if rem == 0 else y[:n_main]).reshape(rows, _LANES)
        lab_main = (lab if rem == 0 else lab[:n_main]).reshape(rows, _LANES)

        ncores = _num_tensorcores()
        per_core_rows = -(-rows // ncores)
        tile_r = min(_MAX_TILE_R, _round_up(per_core_rows, _ROW_ALIGN))
        tile_r = min(tile_r, (rows // _ROW_ALIGN) * _ROW_ALIGN)   # block stays inside array
        nblocks = -(-rows // tile_r)
        if nblocks < ncores:
            ncores = 1
        steps_per_core = -(-nblocks // ncores)
        last_blk = nblocks - 1

        kernel = functools.partial(_pu_kernel, tile_r=tile_r, rows=rows,
                                   steps_per_core=steps_per_core)

        def in_map(c, i):
            # Clamp so out-of-range logical blocks (possible only on core 1)
            # re-read an in-bounds block; their contribution is masked to zero.
            return (jnp.minimum(c * steps_per_core + i, last_blk), 0)

        core_sem = _CORE_PARALLEL if ncores > 1 else _ARBITRARY
        parts = pl.pallas_call(
            kernel,
            out_shape=jax.ShapeDtypeStruct((ncores, 5, _ACC_R, _LANES), jnp.float32),
            grid_spec=pltpu.PrefetchScalarGridSpec(
                num_scalar_prefetch=0,
                grid=(ncores, steps_per_core),
                in_specs=[
                    pl.BlockSpec((tile_r, _LANES), in_map),
                    pl.BlockSpec((tile_r, _LANES), in_map),
                ],
                # One resident (5, 8, 128) accumulator block per "core".
                out_specs=pl.BlockSpec((None, 5, _ACC_R, _LANES),
                                       lambda c, i: (c, 0, 0, 0)),
            ),
            compiler_params=pltpu.CompilerParams(
                dimension_semantics=(core_sem, _ARBITRARY),
                vmem_limit_bytes=32 * 1024 * 1024,
            ),
        )(y_main, lab_main)

        # Small finalize reduce in JAX (10 KiB).  An in-kernel @pl.when(last)
        # epilogue reduce to (5,) would save this dispatch for small batches.
        sums = jnp.sum(parts, axis=(0, 2, 3))     # (5,)
        if rem > 0:
            sums = sums + _masked_sums_jax(y[n_main:], lab[n_main:])

    s_p1, s_p0, s_u0, n_p, n_u = sums

    p_loss = s_p1 / jnp.maximum(n_p, 1.0)
    pn_loss = s_p0 / jnp.maximum(n_p, 1.0)
    u_loss = s_u0 / jnp.maximum(n_u, 1.0)

    risk_p = prior * p_loss
    risk_n = u_loss - prior * pn_loss
    if nnPU:
        # TODO(synk): torch takes a data-dependent Python branch here; this
        # traced select gives the identical forward value (gradient routing in
        # the negative-risk regime differs from some torch implementations).
        total = jnp.where(risk_n < -beta, risk_p - gamma * risk_n, risk_p + risk_n)
    else:
        total = risk_p + risk_n

    # No positives or no unlabeled samples -> 0.0, as in torch.
    return jnp.where((n_p > 0) & (n_u > 0), total, 0.0).astype(jnp.float32)


def _reference_nnpu_loss(outputs, labels, prior, beta=0.0, gamma=1.0, nnPU=True):
    """Pure-JAX reference mirroring the PyTorch module."""
    y = outputs.reshape(-1).astype(jnp.float32)
    lab = labels.reshape(-1)
    pos = lab == 1
    unl = lab == 0
    n_p = jnp.sum(pos)
    n_u = jnp.sum(unl)
    sp_pos = jax.nn.softplus(y)    # BCEWithLogits(y, 0)
    sp_neg = jax.nn.softplus(-y)   # BCEWithLogits(y, 1)
    p_loss = jnp.sum(jnp.where(pos, sp_neg, 0.0)) / jnp.maximum(n_p, 1)
    pn_loss = jnp.sum(jnp.where(pos, sp_pos, 0.0)) / jnp.maximum(n_p, 1)
    u_loss = jnp.sum(jnp.where(unl, sp_pos, 0.0)) / jnp.maximum(n_u, 1)
    risk_p = prior * p_loss
    risk_n = u_loss - prior * pn_loss
    if nnPU:
        total = jnp.where(risk_n < -beta, risk_p - gamma * risk_n, risk_p + risk_n)
    else:
        total = risk_p + risk_n
    return jnp.where((n_p > 0) & (n_u > 0), total, 0.0)


if __name__ == "__main__":
    prior, beta, gamma = 0.3, 0.0, 1.0
    fn = jax.jit(lambda o, l: nnpu_loss(o, l, prior=prior, beta=beta,
                                        gamma=gamma, nnPU=True))

    # Case 1: 128-aligned batch -> fully zero-copy wrapper, single block.
    k_out, k_lab = jax.random.split(jax.random.PRNGKey(0))
    batch = 4096  # PU classification logits / labels, 1-D per-sample
    outputs = jax.random.normal(k_out, (batch,), dtype=jnp.float32)
    labels = jax.random.bernoulli(k_lab, p=0.3, shape=(batch,)).astype(jnp.int32)

    loss = jax.block_until_ready(fn(outputs, labels))
    ref = _reference_nnpu_loss(outputs, labels, prior, beta, gamma, nnPU=True)
    assert jnp.allclose(loss, ref, rtol=1e-5, atol=1e-5), (loss, ref)

    # Case 2: unaligned batch -> multi-step accumulation, partial-block row
    # mask inside the kernel, and the <128-element JAX tail.
    k1, k2 = jax.random.split(jax.random.PRNGKey(1))
    batch2 = 50_000
    outputs2 = jax.random.normal(k1, (batch2,), dtype=jnp.float32)
    labels2 = jax.random.bernoulli(k2, p=0.25, shape=(batch2,)).astype(jnp.int32)

    loss2 = jax.block_until_ready(fn(outputs2, labels2))
    ref2 = _reference_nnpu_loss(outputs2, labels2, prior, beta, gamma, nnPU=True)
    assert jnp.allclose(loss2, ref2, rtol=1e-4, atol=1e-5), (loss2, ref2)

    print("KERNEL_OK")
</pallas_src>

<mosaic_0001>
module attributes {stable_mosaic.version = 11 : i64} {
  func.func @_pu_kernel(%arg0: i32, %arg1: i32, %arg2: memref<32x128xf32, #tpu.memory_space<vmem>>, %arg3: memref<32x128xi32, #tpu.memory_space<vmem>>, %arg4: memref<1x5x8x128xf32, #tpu.memory_space<vmem>>) attributes {dimension_semantics = [#tpu.dimension_semantics<arbitrary>, #tpu.dimension_semantics<arbitrary>], iteration_bounds = array<i64: 1, 1>, scalar_prefetch = 0 : i64, scratch_operands = 0 : i64, tpu.core_type = #tpu.core_type<tc>, window_params = [{transform_indices = @transform_0, window_bounds = array<i64: 32, 128>}, {transform_indices = @transform_1, window_bounds = array<i64: 32, 128>}, {transform_indices = @transform_2, window_bounds = array<i64: 1, 5, 8, 128>}]} {
    %c0_i32 = arith.constant 0 : i32
    %0 = arith.cmpi eq, %arg1, %c0_i32 : i32
    %1 = arith.extui %0 : i1 to i32
    %c0_i32_0 = arith.constant 0 : i32
    %2 = arith.cmpi ne, %1, %c0_i32_0 : i32
    scf.if %2 {
      %cst_50 = arith.constant 0.000000e+00 : f32
      %77 = vector.broadcast %cst_50 : f32 to vector<5x8x128xf32>
      %c0_51 = arith.constant 0 : index
      %c0_52 = arith.constant 0 : index
      %c0_53 = arith.constant 0 : index
      %c0_54 = arith.constant 0 : index
      %78 = vector.load %arg4[%c0_51, %c0_52, %c0_53, %c0_54] : memref<1x5x8x128xf32, #tpu.memory_space<vmem>>, vector<1x5x8x128xf32>
      %79 = vector.shape_cast %78 : vector<1x5x8x128xf32> to vector<5x8x128xf32>
      %80 = vector.shape_cast %77 : vector<5x8x128xf32> to vector<1x5x8x128xf32>
      tpu.vector_store %arg4[%c0_51, %c0_52, %c0_53, %c0_54], %80 {strides = array<i32>} : memref<1x5x8x128xf32, #tpu.memory_space<vmem>>, vector<1x5x8x128xf32>,
    } else {
    }
    %c1_i32 = arith.constant 1 : i32
    %3 = arith.muli %arg0, %c1_i32 : i32
    %4 = arith.addi %3, %arg1 : i32
    %c32_i32 = arith.constant 32 : i32
    %5 = arith.muli %4, %c32_i32 : i32
    %6 = tpu.iota {dimensions = array<i32: 0>} : vector<32x128xi32>
    %7 = vector.broadcast %5 : i32 to vector<32x128xi32>
    %8 = arith.addi %7, %6 : vector<32x128xi32>
    %c32_i32_1 = arith.constant 32 : i32
    %9 = vector.broadcast %c32_i32_1 : i32 to vector<32x128xi32>
    %10 = arith.cmpi slt, %8, %9 : vector<32x128xi32>
    %c0 = arith.constant 0 : index
    %c0_2 = arith.constant 0 : index
    %11 = vector.load %arg2[%c0, %c0_2] : memref<32x128xf32, #tpu.memory_space<vmem>>, vector<32x128xf32>
    %cst = arith.constant 0.000000e+00 : f32
    %12 = vector.broadcast %cst : f32 to vector<32x128xf32>
    %13 = arith.select %10, %11, %12 : vector<32x128xi1>, vector<32x128xf32>
    %c0_3 = arith.constant 0 : index
    %c0_4 = arith.constant 0 : index
    %14 = vector.load %arg3[%c0_3, %c0_4] : memref<32x128xi32, #tpu.memory_space<vmem>>, vector<32x128xi32>
    %c1_i32_5 = arith.constant 1 : i32
    %15 = vector.broadcast %c1_i32_5 : i32 to vector<32x128xi32>
    %16 = arith.cmpi eq, %14, %15 : vector<32x128xi32>
    %17 = arith.andi %10, %16 : vector<32x128xi1>
    %18 = arith.extui %17 : vector<32x128xi1> to vector<32x128xi32>
    %19 = arith.sitofp %18 : vector<32x128xi32> to vector<32x128xf32>
    %c0_i32_6 = arith.constant 0 : i32
    %20 = vector.broadcast %c0_i32_6 : i32 to vector<32x128xi32>
    %21 = arith.cmpi eq, %14, %20 : vector<32x128xi32>
    %22 = arith.andi %10, %21 : vector<32x128xi1>
    %23 = arith.extui %22 : vector<32x128xi1> to vector<32x128xi32>
    %24 = arith.sitofp %23 : vector<32x128xi32> to vector<32x128xf32>
    %cst_7 = arith.constant 0.000000e+00 : f32
    %25 = vector.broadcast %cst_7 : f32 to vector<32x128xf32>
    %26 = arith.maximumf %13, %25 : vector<32x128xf32>
    %27 = math.absf %13 : vector<32x128xf32>
    %cst_8 = arith.constant 0.000000e+00 : f32
    %28 = vector.broadcast %cst_8 : f32 to vector<32x128xf32>
    %29 = arith.subf %28, %27 : vector<32x128xf32>
    %30 = math.exp %29 : vector<32x128xf32>
    %31 = math.log1p %30 : vector<32x128xf32>
    %32 = arith.addf %26, %31 : vector<32x128xf32>
    %33 = arith.subf %32, %13 : vector<32x128xf32>
    %c0_9 = arith.constant 0 : index
    %c0_10 = arith.constant 0 : index
    %c0_11 = arith.constant 0 : index
    %c0_12 = arith.constant 0 : index
    %34 = vector.load %arg4[%c0_9, %c0_10, %c0_11, %c0_12] : memref<1x5x8x128xf32, #tpu.memory_space<vmem>>, vector<1x1x8x128xf32>
    %35 = vector.shape_cast %34 : vector<1x1x8x128xf32> to vector<8x128xf32>
    %36 = arith.mulf %33, %19 : vector<32x128xf32>
    %37 = vector.shape_cast %36 : vector<32x128xf32> to vector<4x8x128xf32>
    %cst_13 = arith.constant dense<0.000000e+00> : vector<8x128xf32>
    %38 = vector.multi_reduction <add>, %37, %cst_13 [0] : vector<4x8x128xf32> to vector<8x128xf32>
    %39 = arith.addf %35, %38 : vector<8x128xf32>
    %c0_14 = arith.constant 0 : index
    %c0_15 = arith.constant 0 : index
    %c0_16 = arith.constant 0 : index
    %c0_17 = arith.constant 0 : index
    %40 = vector.load %arg4[%c0_14, %c0_15, %c0_16, %c0_17] : memref<1x5x8x128xf32, #tpu.memory_space<vmem>>, vector<1x1x8x128xf32>
    %41 = vector.shape_cast %40 : vector<1x1x8x128xf32> to vector<8x128xf32>
    %42 = vector.shape_cast %39 : vector<8x128xf32> to vector<1x1x8x128xf32>
    tpu.vector_store %arg4[%c0_14, %c0_15, %c0_16, %c0_17], %42 {strides = array<i32>} : memref<1x5x8x128xf32, #tpu.memory_space<vmem>>, vector<1x1x8x128xf32>,
    %c0_18 = arith.constant 0 : index
    %c1 = arith.constant 1 : index
    %c0_19 = arith.constant 0 : index
    %c0_20 = arith.constant 0 : index
    %43 = vector.load %arg4[%c0_18, %c1, %c0_19, %c0_20] : memref<1x5x8x128xf32, #tpu.memory_space<vmem>>, vector<1x1x8x128xf32>
    %44 = vector.shape_cast %43 : vector<1x1x8x128xf32> to vector<8x128xf32>
    %45 = arith.mulf %32, %19 : vector<32x128xf32>
    %46 = vector.shape_cast %45 : vector<32x128xf32> to vector<4x8x128xf32>
    %cst_21 = arith.constant dense<0.000000e+00> : vector<8x128xf32>
    %47 = vector.multi_reduction <add>, %46, %cst_21 [0] : vector<4x8x128xf32> to vector<8x128xf32>
    %48 = arith.addf %44, %47 : vector<8x128xf32>
    %c0_22 = arith.constant 0 : index
    %c1_23 = arith.constant 1 : index
    %c0_24 = arith.constant 0 : index
    %c0_25 = arith.constant 0 : index
    %49 = vector.load %arg4[%c0_22, %c1_23, %c0_24, %c0_25] : memref<1x5x8x128xf32, #tpu.memory_space<vmem>>, vector<1x1x8x128xf32>
    %50 = vector.shape_cast %49 : vector<1x1x8x128xf32> to vector<8x128xf32>
    %51 = vector.shape_cast %48 : vector<8x128xf32> to vector<1x1x8x128xf32>
    tpu.vector_store %arg4[%c0_22, %c1_23, %c0_24, %c0_25], %51 {strides = array<i32>} : memref<1x5x8x128xf32, #tpu.memory_space<vmem>>, vector<1x1x8x128xf32>,
    %c0_26 = arith.constant 0 : index
    %c2 = arith.constant 2 : index
    %c0_27 = arith.constant 0 : index
    %c0_28 = arith.constant 0 : index
    %52 = vector.load %arg4[%c0_26, %c2, %c0_27, %c0_28] : memref<1x5x8x128xf32, #tpu.memory_space<vmem>>, vector<1x1x8x128xf32>
    %53 = vector.shape_cast %52 : vector<1x1x8x128xf32> to vector<8x128xf32>
    %54 = arith.mulf %32, %24 : vector<32x128xf32>
    %55 = vector.shape_cast %54 : vector<32x128xf32> to vector<4x8x128xf32>
    %cst_29 = arith.constant dense<0.000000e+00> : vector<8x128xf32>
    %56 = vector.multi_reduction <add>, %55, %cst_29 [0] : vector<4x8x128xf32> to vector<8x128xf32>
    %57 = arith.addf %53, %56 : vector<8x128xf32>
    %c0_30 = arith.constant 0 : index
    %c2_31 = arith.constant 2 : index
    %c0_32 = arith.constant 0 : index
    %c0_33 = arith.constant 0 : index
    %58 = vector.load %arg4[%c0_30, %c2_31, %c0_32, %c0_33] : memref<1x5x8x128xf32, #tpu.memory_space<vmem>>, vector<1x1x8x128xf32>
    %59 = vector.shape_cast %58 : vector<1x1x8x128xf32> to vector<8x128xf32>
    %60 = vector.shape_cast %57 : vector<8x128xf32> to vector<1x1x8x128xf32>
    tpu.vector_store %arg4[%c0_30, %c2_31, %c0_32, %c0_33], %60 {strides = array<i32>} : memref<1x5x8x128xf32, #tpu.memory_space<vmem>>, vector<1x1x8x128xf32>,
    %c0_34 = arith.constant 0 : index
    %c3 = arith.constant 3 : index
    %c0_35 = arith.constant 0 : index
    %c0_36 = arith.constant 0 : index
    %61 = vector.load %arg4[%c0_34, %c3, %c0_35, %c0_36] : memref<1x5x8x128xf32, #tpu.memory_space<vmem>>, vector<1x1x8x128xf32>
    %62 = vector.shape_cast %61 : vector<1x1x8x128xf32> to vector<8x128xf32>
    %63 = vector.shape_cast %19 : vector<32x128xf32> to vector<4x8x128xf32>
    %cst_37 = arith.constant dense<0.000000e+00> : vector<8x128xf32>
    %64 = vector.multi_reduction <add>, %63, %cst_37 [0] : vector<4x8x128xf32> to vector<8x128xf32>
    %65 = arith.addf %62, %64 : vector<8x128xf32>
    %c0_38 = arith.constant 0 : index
    %c3_39 = arith.constant 3 : index
    %c0_40 = arith.constant 0 : index
    %c0_41 = arith.constant 0 : index
    %66 = vector.load %arg4[%c0_38, %c3_39, %c0_40, %c0_41] : memref<1x5x8x128xf32, #tpu.memory_space<vmem>>, vector<1x1x8x128xf32>
    %67 = vector.shape_cast %66 : vector<1x1x8x128xf32> to vector<8x128xf32>
    %68 = vector.shape_cast %65 : vector<8x128xf32> to vector<1x1x8x128xf32>
    tpu.vector_store %arg4[%c0_38, %c3_39, %c0_40, %c0_41], %68 {strides = array<i32>} : memref<1x5x8x128xf32, #tpu.memory_space<vmem>>, vector<1x1x8x128xf32>,
    %c0_42 = arith.constant 0 : index
    %c4 = arith.constant 4 : index
    %c0_43 = arith.constant 0 : index
    %c0_44 = arith.constant 0 : index
    %69 = vector.load %arg4[%c0_42, %c4, %c0_43, %c0_44] : memref<1x5x8x128xf32, #tpu.memory_space<vmem>>, vector<1x1x8x128xf32>
    %70 = vector.shape_cast %69 : vector<1x1x8x128xf32> to vector<8x128xf32>
    %71 = vector.shape_cast %24 : vector<32x128xf32> to vector<4x8x128xf32>
    %cst_45 = arith.constant dense<0.000000e+00> : vector<8x128xf32>
    %72 = vector.multi_reduction <add>, %71, %cst_45 [0] : vector<4x8x128xf32> to vector<8x128xf32>
    %73 = arith.addf %70, %72 : vector<8x128xf32>
    %c0_46 = arith.constant 0 : index
    %c4_47 = arith.constant 4 : index
    %c0_48 = arith.constant 0 : index
    %c0_49 = arith.constant 0 : index
    %74 = vector.load %arg4[%c0_46, %c4_47, %c0_48, %c0_49] : memref<1x5x8x128xf32, #tpu.memory_space<vmem>>, vector<1x1x8x128xf32>
    %75 = vector.shape_cast %74 : vector<1x1x8x128xf32> to vector<8x128xf32>
    %76 = vector.shape_cast %73 : vector<8x128xf32> to vector<1x1x8x128xf32>
    tpu.vector_store %arg4[%c0_46, %c4_47, %c0_48, %c0_49], %76 {strides = array<i32>} : memref<1x5x8x128xf32, #tpu.memory_space<vmem>>, vector<1x1x8x128xf32>,
    return
  }
  func.func @transform_0(%arg0: i32, %arg1: i32) -> (i32, i32) {
    %c1_i32 = arith.constant 1 : i32
    %0 = arith.muli %arg0, %c1_i32 : i32
    %1 = arith.addi %0, %arg1 : i32
    %c0_i32 = arith.constant 0 : i32
    %2 = arith.minsi %1, %c0_i32 : i32
    %c0_i32_0 = arith.constant 0 : i32
    %c0_i32_1 = arith.constant 0 : i32
    return %2, %c0_i32_0 : i32, i32
  }
  func.func @transform_1(%arg0: i32, %arg1: i32) -> (i32, i32) {
    %c1_i32 = arith.constant 1 : i32
    %0 = arith.muli %arg0, %c1_i32 : i32
    %1 = arith.addi %0, %arg1 : i32
    %c0_i32 = arith.constant 0 : i32
    %2 = arith.minsi %1, %c0_i32 : i32
    %c0_i32_0 = arith.constant 0 : i32
    %c0_i32_1 = arith.constant 0 : i32
    return %2, %c0_i32_0 : i32, i32
  }
  func.func @transform_2(%arg0: i32, %arg1: i32) -> (i32, i32, i32, i32) {
    %c0_i32 = arith.constant 0 : i32
    %c0_i32_0 = arith.constant 0 : i32
    %c0_i32_1 = arith.constant 0 : i32
    %c0_i32_2 = arith.constant 0 : i32
    return %arg0, %c0_i32, %c0_i32_0, %c0_i32_1 : i32, i32, i32, i32
  }
}

</mosaic_0001>

<bundles_post_ra>
// kernel: _lambda_.1
= control target key start
LH: loop header
LB: loop body
LE: loop exit
PB: predicated region body
PF: predicated region fallthrough
CT: control target
= control target key end

     0   :  { %7 = vsyncpa [#allocation3], 0  ;;  %s451_s0 = inlined_call_operand.hbm [shape: f32[32,128], index: 0, kind: input, shape index: {}]   ;;  %s452_s1 = inlined_call_operand.hbm [shape: s32[32,128], index: 1, kind: input, shape index: {}]   ;;  %s453_s2 = inlined_call_operand.vmem [shape: f32[1,5,8,128], index: 2, kind: output, shape index: {}]  }
   0x1   :  { %s19_s11 = sshll.u32 %s451_s0, 4  ;;  %s20_s11 = int_to_ptr.hbm [resolvable:$true] %s19_s11 }
   0x2   :  { %8 = vsyncpa [#allocation5], 0  ;;  %s341_s12 = smov [#allocation2]   ;;  %s38_s16 = sshll.u32 %s452_s1, 4  ;;  %s39_s16 = int_to_ptr.hbm [resolvable:$true] %s38_s16 }
   0x3   :  { %s21_s13 = sshll.u32 %s341_s12, 4  ;;  %s342_s17 = smov 128   ;;  %s22_s13 = int_to_ptr.vmem [resolvable:$true] %s21_s13 }
   0x4   :  { %s343_s18 = smov 8   ;;  %s344_s19 = smov [#allocation4]  }
   0x5   :  { %27 = dma.hbm_to_vmem [thread:$0]  %s20_s11, 512, %s22_s13, [#allocation3], %s342_s17, %s342_s17, %s343_s18  }
   0x6   :  { %s40_s20 = sshll.u32 %s344_s19, 4  ;;  %s41_s20 = int_to_ptr.vmem [resolvable:$true] %s40_s20 }
   0x7   :  { %46 = dma.hbm_to_vmem [thread:$0]  %s39_s16, 512, %s41_s20, [#allocation5], %s342_s17, %s342_s17, %s343_s18  }
   0x8   :  { %337 = dma.done.wait [#allocation3], 512  }
   0x9   :  { %338 = vsyncadd [#allocation3], 4294966784 }
   0xa   :  { %339 = dma.done.wait [#allocation5], 512  }
   0xb   :  { %340 = vsyncadd [#allocation5], 4294966784  ;;  %v367_v0 = vld [vmem:[#allocation2] sm:$0xff]  ;;  %v369_v1 = vld [vmem:[#allocation2 + $0x8] sm:$0xff]  ;;  %v345_v10 = vmov 0.0  }
   0xc   :  { %v371_v2 = vld [vmem:[#allocation2 + $0x10] sm:$0xff]  ;;  %v96_v3 = vld [vmem:[#allocation4] sm:$0xff]  ;;  %v97_v4 = vld [vmem:[#allocation4 + $0x8] sm:$0xff]  ;;  %v136_v8 = vand.u32 2147483647, %v367_v0  ;;  %v132_v56 = vmax.f32 %v367_v0, 0.0 }
   0xd   :  { %v373_v5 = vld [vmem:[#allocation2 + $0x18] sm:$0xff]  ;;  %v98_v6 = vld [vmem:[#allocation4 + $0x10] sm:$0xff]  ;;  %vm100_vm0 = vcmp.eq.s32.totalorder %v96_v3, 1  ;;  %vm101_vm1 = vcmp.eq.s32.totalorder %v97_v4, 1  ;;  %v137_v9 = vand.u32 2147483647, %v369_v1 }
   0xe   :  { %v99_v7 = vld [vmem:[#allocation4 + $0x18] sm:$0xff]  ;;  %vm102_vm2 = vcmp.eq.s32.totalorder %v98_v6, 1  ;;  %vm116_vm4 = vcmp.eq.s32.totalorder %v96_v3, 0  ;;  %v377_v11 = vsel %vm100_vm0, 1.0, %v345_v10  ;;  %v138_v12 = vand.u32 2147483647, %v371_v2 }
   0xf   :  { %vm103_vm3 = vcmp.eq.s32.totalorder %v99_v7, 1  ;;  %v139_v13 = vand.u32 2147483647, %v373_v5  ;;  %vm117_vm5 = vcmp.eq.s32.totalorder %v97_v4, 0  ;;  %v381_v14 = vsel %vm101_vm1, 1.0, %v345_v10 }
  0x10   :  { %v383_v15 = vsel %vm102_vm2, 1.0, %v345_v10  ;;  %v140_v16 = vsub.f32 0.0, %v136_v8  ;;  %v141_v17 = vsub.f32 0.0, %v137_v9  ;;  %v142_v18 = vsub.f32 0.0, %v138_v12 }
  0x11   :  { %v143_v19 = vsub.f32 0.0, %v139_v13  ;;  %vm118_vm6 = vcmp.eq.s32.totalorder %v98_v6, 0  ;;  %v385_v20 = vsel %vm116_vm4, 1.0, %v345_v10  ;;  %v387_v23 = vsel %vm117_vm5, 1.0, %v345_v10 }
  0x12   :  { %v144_v21 = vmul.f32 1.442695, %v140_v16  ;;  %v146_v22 = vmul.f32 1.442695, %v141_v17  ;;  %v230_v24 = vadd.f32 %v381_v14, %v377_v11  ;;  %v148_v25 = vmul.f32 1.442695, %v142_v18 }
  0x13   :  { %v150_v26 = vmul.f32 1.442695, %v143_v19  ;;  %vm119_vm7 = vcmp.eq.s32.totalorder %v99_v7, 0  ;;  %v237_v27 = vadd.f32 %v387_v23, %v385_v20  ;;  %v393_v28 = vsel %vm118_vm6, 1.0, %v345_v10 }
  0x14   :  { %273 = vpow2.f32 %v144_v21  ;;  %v231_v29 = vadd.f32 %v383_v15, %v230_v24  ;;  %v397_v30 = vsel %vm103_vm3, 1.0, %v345_v10  ;;  %v400_v32 = vsel %vm119_vm7, 1.0, %v345_v10 }
  0x15   :  { %275 = vpow2.f32 %v146_v22  ;;  %v238_v31 = vadd.f32 %v393_v28, %v237_v27  ;;  %v133_v61 = vmax.f32 %v369_v1, 0.0  ;;  %v134_v6 = vmax.f32 %v371_v2, 0.0 }
  0x16   :  { %277 = vpow2.f32 %v148_v25  ;;  %v232_v33 = vadd.f32 %v397_v30, %v231_v29  ;;  %v135_v13 = vmax.f32 %v373_v5, 0.0 }
  0x17   :  { %279 = vpow2.f32 %v150_v26  ;;  %v239_v34 = vadd.f32 %v400_v32, %v238_v31 }
  0x18   :  { %265 = vst [vmem:[%s453_s2 + $0x18] sm:$0xff] %v232_v33 }
  0x19   :  { %267 = vst [vmem:[%s453_s2 + $0x20] sm:$0xff] %v239_v34 }
  0x1a   :  { %v274_v35 = vpop.eup %273 }
  0x1b   :  { %v276_v36 = vpop.eup %275  ;;  %v152_v37 = vadd.f32 1.0, %v274_v35  ;;  %v155_v38 = vmul.f32 -0.5, %v274_v35  ;;  %v158_v46 = vand.u32 2147483647, %v274_v35 }
  0x1c   :  { %v278_v39 = vpop.eup %277  ;;  %v161_v40 = vadd.f32 1.0, %v276_v36  ;;  %v164_v41 = vmul.f32 -0.5, %v276_v36  ;;  %v167_v49 = vand.u32 2147483647, %v276_v36 }
  0x1d   :  { %v280_v42 = vpop.eup %279  ;;  %281 = vlog2.f32 %v152_v37  ;;  %v170_v43 = vadd.f32 1.0, %v278_v39  ;;  %v156_v44 = vadd.f32 1.0, %v155_v38  ;;  %v173_v45 = vmul.f32 -0.5, %v278_v39 }
  0x1e   :  { %283 = vlog2.f32 %v161_v40  ;;  %v165_v47 = vadd.f32 1.0, %v164_v41  ;;  %v179_v48 = vadd.f32 1.0, %v280_v42  ;;  %v182_v51 = vmul.f32 -0.5, %v280_v42 }
  0x1f   :  { %285 = vlog2.f32 %v170_v43  ;;  %v174_v50 = vadd.f32 1.0, %v173_v45  ;;  %v176_v52 = vand.u32 2147483647, %v278_v39  ;;  %v157_v53 = vmul.f32 %v274_v35, %v156_v44 }
  0x20   :  { %287 = vlog2.f32 %v179_v48  ;;  %v183_v54 = vadd.f32 1.0, %v182_v51  ;;  %vm411_vm8 = vcmp.lt.f32.partialorder %v158_v46, 0.0004427343  ;;  %v166_v58 = vmul.f32 %v276_v36, %v165_v47 }
  0x21   :  { %v185_v59 = vand.u32 2147483647, %v280_v42  ;;  %vm416_vm9 = vcmp.lt.f32.partialorder %v167_v49, 0.0004427343  ;;  %v175_v3 = vmul.f32 %v278_v39, %v174_v50  ;;  %vm177_vm10 = vcmp.lt.f32.partialorder %v176_v52, 0.0004427343 }
  0x22   :  { %v184_v10 = vmul.f32 %v280_v42, %v183_v54 }
  0x23   :  { %v282_v55 = vpop.eup %281  ;;  %vm186_vm11 = vcmp.lt.f32.partialorder %v185_v59, 0.0004427343 }
  0x24   :  { %v284_v60 = vpop.eup %283  ;;  %v154_v62 = vmul.f32 0.6931472, %v282_v55 }
  0x25   :  { %v286_v4 = vpop.eup %285  ;;  %v163_v7 = vmul.f32 0.6931472, %v284_v60 }
  0x26   :  { %v160_v8 = vsel %vm411_vm8, %v157_v53, %v154_v62  ;;  %v172_v9 = vmul.f32 0.6931472, %v286_v4  ;;  %v288_v12 = vpop.eup %287 }
  0x27   :  { %v169_v16 = vsel %vm416_vm9, %v166_v58, %v163_v7  ;;  %v188_v17 = vadd.f32 %v160_v8, %v132_v56  ;;  %v181_v19 = vmul.f32 0.6931472, %v288_v12 }
  0x28   :  { %v178_v18 = vsel %vm177_vm10, %v175_v3, %v172_v9  ;;  %v189_v21 = vadd.f32 %v169_v16, %v133_v61 }
  0x29   :  { %v190_v22 = vadd.f32 %v178_v18, %v134_v6  ;;  %v192_v24 = vsub.f32 %v188_v17, %v367_v0  ;;  %v208_v25 = vmul.f32 %v377_v11, %v188_v17  ;;  %v219_v26 = vmul.f32 %v385_v20, %v188_v17 }
  0x2a   :  { %v187_v27 = vsel %vm186_vm11, %v184_v10, %v181_v19  ;;  %v193_v29 = vsub.f32 %v189_v21, %v369_v1  ;;  %v209_v31 = vmul.f32 %v381_v14, %v189_v21  ;;  %v220_v33 = vmul.f32 %v387_v23, %v189_v21 }
  0x2b   :  { %v191_v34 = vadd.f32 %v187_v27, %v135_v13  ;;  %v194_v35 = vsub.f32 %v190_v22, %v371_v2  ;;  %v197_v36 = vmul.f32 %v377_v11, %v192_v24  ;;  %v210_v37 = vmul.f32 %v383_v15, %v190_v22 }
  0x2c   :  { %v198_v0 = vmul.f32 %v381_v14, %v193_v29  ;;  %v212_v38 = vadd.f32 %v209_v31, %v208_v25  ;;  %v221_v39 = vmul.f32 %v393_v28, %v190_v22  ;;  %v223_v20 = vadd.f32 %v220_v33, %v219_v26 }
  0x2d   :  { %v195_v40 = vsub.f32 %v191_v34, %v373_v5  ;;  %v199_v1 = vmul.f32 %v383_v15, %v194_v35  ;;  %v211_v41 = vmul.f32 %v397_v30, %v191_v34  ;;  %v222_v23 = vmul.f32 %v400_v32, %v191_v34 }
  0x2e   :  { %v201_v42 = vadd.f32 %v198_v0, %v197_v36  ;;  %v213_v2 = vadd.f32 %v212_v38, %v210_v37  ;;  %v224_v43 = vadd.f32 %v223_v20, %v221_v39 }
  0x2f   :  { %v200_v11 = vmul.f32 %v397_v30, %v195_v40 }
  0x30   :  { %v202_v44 = vadd.f32 %v201_v42, %v199_v1  ;;  %v214_v45 = vadd.f32 %v213_v2, %v211_v41  ;;  %v225_v14 = vadd.f32 %v224_v43, %v222_v23 }
  0x32   :  { %v203_v46 = vadd.f32 %v202_v44, %v200_v11  ;;  %261 = vst [vmem:[%s453_s2 + $0x8] sm:$0xff] %v214_v45 }
  0x33   :  { %263 = vst [vmem:[%s453_s2 + $0x10] sm:$0xff] %v225_v14 }
  0x34   :  { %205 = vst [vmem:[%s453_s2] sm:$0xff] %v203_v46 }
  0x35   :  { %246 = vsyncpa [#allocation3], 1 }
  0x36   :  { %247 = vsyncpa [#allocation5], 1 }

</bundles_post_ra>
